<compile_context>
chip_gen: v6e
topology: v6e:2x2x1
jax: 0.10.0
libtpu: 0.0.40
codegen_flags: <defaults>
</compile_context>

<pallas_src>
import jax
import jax.numpy as jnp
from jax.experimental import pallas as pl
from jax.experimental.pallas import tpu as pltpu

# Module constants (mirroring the PyTorch file)
BIAS0 = True
POSTERIOR_MU_INIT0 = 0.0
POSTERIOR_RHO_INIT0 = -7.0
WEIGHT_MU_INIT = 0.1
BIAS_MU_INIT = 0.1

_TM_CAP = 4096            # absolute row-tile cap (multiple of 8)
_VMEM_BUDGET = 8 << 20    # ~8 MiB for the double-buffered x/out tiles (safe on v5e)


def _softplus(x):
    # Stable softplus: equals log1p(exp(x)) exactly where that doesn't overflow.
    return jnp.where(x > 20.0, x, jnp.log1p(jnp.exp(x)))


def _pick_tm(m, in_feat, out_feat):
    """Largest row tile whose double-buffered x+out working set fits the budget."""
    per_row_bytes = 2 * 4 * (in_feat + out_feat)          # 2 buffers * f32
    tm = (_VMEM_BUDGET // per_row_bytes) // 8 * 8          # multiple of 8
    tm = max(8, min(_TM_CAP, tm))
    return m if m <= tm else tm


def _fuse_impute_kernel(x_ref, wmu_ref, wrho_ref, weps_ref,
                        bmu_ref, brho_ref, beps_ref, o_ref):
    # Sample weight:  W = mu + softplus(rho) * eps   laid out as (in_feat, out_feat)
    w = wmu_ref[...] + _softplus(wrho_ref[...]) * weps_ref[...]

    # Sample bias:    b = mu + softplus(rho) * eps   (1, out_feat)
    b = bmu_ref[...] + _softplus(brho_ref[...]) * beps_ref[...]

    # F.linear(x, W, b) = x @ W^T + b; weights are pre-transposed, so plain x @ w
    # feeds the MXU directly with f32 accumulation -- no in-kernel transpose.
    y = jnp.dot(x_ref[...], w, preferred_element_type=jnp.float32) + b
    o_ref[...] = y.astype(o_ref.dtype)


def fuse_imputation_forward(x, weight_mu, weight_rho, eps_w,
                            bias_mu, bias_rho, eps_b):
    """x: (..., 2*num_vars) float32 -> (..., num_vars) float32."""
    in_feat = x.shape[-1]
    out_feat = weight_mu.shape[0]
    assert weight_mu.shape == (out_feat, in_feat)

    lead_shape = x.shape[:-1]
    m = 1
    for d in lead_shape:
        m *= d
    x_flat = x.reshape(m, in_feat)

    # One-time XLA transposes outside the kernel: (out, in) -> (in, out).
    wmu_t = weight_mu.T
    wrho_t = weight_rho.T
    weps_t = eps_w.T

    bmu2 = bias_mu.reshape(1, out_feat)
    brho2 = bias_rho.reshape(1, out_feat)
    beps2 = eps_b.reshape(1, out_feat)

    tm = _pick_tm(m, in_feat, out_feat)
    grid = (pl.cdiv(m, tm),)

    # Advisory cost estimate for XLA's scheduler.
    cost = pl.CostEstimate(
        flops=2 * m * in_feat * out_feat,
        transcendentals=grid[0] * (in_feat * out_feat + out_feat),
        bytes_accessed=4 * (m * in_feat
                            + 3 * in_feat * out_feat
                            + 3 * out_feat
                            + m * out_feat),
    )

    out = pl.pallas_call(
        _fuse_impute_kernel,
        out_shape=jax.ShapeDtypeStruct((m, out_feat), jnp.float32),
        grid=grid,
        in_specs=[
            pl.BlockSpec((tm, in_feat), lambda i: (i, 0)),        # x tile (pipelined)
            pl.BlockSpec((in_feat, out_feat), lambda i: (0, 0)),  # weight_mu^T (resident)
            pl.BlockSpec((in_feat, out_feat), lambda i: (0, 0)),  # weight_rho^T (resident)
            pl.BlockSpec((in_feat, out_feat), lambda i: (0, 0)),  # eps_w^T (resident)
            pl.BlockSpec((1, out_feat), lambda i: (0, 0)),        # bias_mu (resident)
            pl.BlockSpec((1, out_feat), lambda i: (0, 0)),        # bias_rho (resident)
            pl.BlockSpec((1, out_feat), lambda i: (0, 0)),        # eps_b (resident)
        ],
        out_specs=pl.BlockSpec((tm, out_feat), lambda i: (i, 0)),
        compiler_params=pltpu.CompilerParams(
            dimension_semantics=("parallel",)),
        cost_estimate=cost,
    )(x_flat, wmu_t, wrho_t, weps_t, bmu2, brho2, beps2)

    return out.reshape(*lead_shape, out_feat)


def reference_forward(x, weight_mu, weight_rho, eps_w, bias_mu, bias_rho, eps_b):
    w = weight_mu + _softplus(weight_rho) * eps_w
    b = bias_mu + _softplus(bias_rho) * eps_b
    return jnp.einsum('...i,oi->...o', x, w) + b


if __name__ == "__main__":
    key = jax.random.PRNGKey(0)
    k_x, k_wmu, k_wrho, k_weps, k_bmu, k_brho, k_beps = jax.random.split(key, 7)

    # Small shapes consistent with the module: batch=2, seq=8, num_vars=64
    # so the fused input has 2*num_vars = 128 features.
    batch, seq, num_vars = 2, 8, 64
    in_feat = 2 * num_vars

    x = jax.random.normal(k_x, (batch, seq, in_feat), dtype=jnp.float32)

    # Deterministic parameter init (mirrors BayesianLinear init scales):
    #   mu ~ N(mu_init, 0.1),  rho ~ N(posterior_rho_init, 0.1)
    weight_mu = WEIGHT_MU_INIT + 0.1 * jax.random.normal(
        k_wmu, (num_vars, in_feat), dtype=jnp.float32)
    weight_rho = POSTERIOR_RHO_INIT0 + 0.1 * jax.random.normal(
        k_wrho, (num_vars, in_feat), dtype=jnp.float32)
    bias_mu = BIAS_MU_INIT + 0.1 * jax.random.normal(
        k_bmu, (num_vars,), dtype=jnp.float32)
    bias_rho = POSTERIOR_RHO_INIT0 + 0.1 * jax.random.normal(
        k_brho, (num_vars,), dtype=jnp.float32)

    # Reparameterization noise (deterministic via PRNGKey(0) splits).
    eps_w = jax.random.normal(k_weps, (num_vars, in_feat), dtype=jnp.float32)
    eps_b = jax.random.normal(k_beps, (num_vars,), dtype=jnp.float32)

    # TODO(synk): log_prior / log_variational_posterior KL bookkeeping of
    # BayesianLinear (scalar side outputs for the ELBO) is not computed here;
    # only the returned tensor of forward() is reproduced.

    out = fuse_imputation_forward(x, weight_mu, weight_rho, eps_w,
                                  bias_mu, bias_rho, eps_b)
    out = jax.block_until_ready(out)

    ref = reference_forward(x, weight_mu, weight_rho, eps_w,
                            bias_mu, bias_rho, eps_b)
    assert out.shape == (batch, seq, num_vars)
    assert jnp.allclose(out, ref, atol=1e-4, rtol=1e-4)

    print("KERNEL_OK")
</pallas_src>

<mosaic_0001>
module attributes {stable_mosaic.version = 11 : i64} {
  func.func @_fuse_impute_kernel(%arg0: i32, %arg1: memref<16x128xf32, #tpu.memory_space<vmem>>, %arg2: memref<128x64xf32, #tpu.memory_space<vmem>>, %arg3: memref<128x64xf32, #tpu.memory_space<vmem>>, %arg4: memref<128x64xf32, #tpu.memory_space<vmem>>, %arg5: memref<1x64xf32, #tpu.memory_space<vmem>>, %arg6: memref<1x64xf32, #tpu.memory_space<vmem>>, %arg7: memref<1x64xf32, #tpu.memory_space<vmem>>, %arg8: memref<16x64xf32, #tpu.memory_space<vmem>>) attributes {dimension_semantics = [#tpu.dimension_semantics<parallel>], iteration_bounds = array<i64: 1>, scalar_prefetch = 0 : i64, scratch_operands = 0 : i64, tpu.core_type = #tpu.core_type<tc>, window_params = [{transform_indices = @transform_0, window_bounds = array<i64: 16, 128>}, {pipeline_mode = #tpu.pipeline_mode<synchronous>, transform_indices = @transform_1, window_bounds = array<i64: 128, 64>}, {pipeline_mode = #tpu.pipeline_mode<synchronous>, transform_indices = @transform_2, window_bounds = array<i64: 128, 64>}, {pipeline_mode = #tpu.pipeline_mode<synchronous>, transform_indices = @transform_3, window_bounds = array<i64: 128, 64>}, {pipeline_mode = #tpu.pipeline_mode<synchronous>, transform_indices = @transform_4, window_bounds = array<i64: 1, 64>}, {pipeline_mode = #tpu.pipeline_mode<synchronous>, transform_indices = @transform_5, window_bounds = array<i64: 1, 64>}, {pipeline_mode = #tpu.pipeline_mode<synchronous>, transform_indices = @transform_6, window_bounds = array<i64: 1, 64>}, {transform_indices = @transform_7, window_bounds = array<i64: 16, 64>}]} {
    %c0 = arith.constant 0 : index
    %c0_0 = arith.constant 0 : index
    %0 = vector.load %arg2[%c0, %c0_0] : memref<128x64xf32, #tpu.memory_space<vmem>>, vector<128x64xf32>
    %c0_1 = arith.constant 0 : index
    %c0_2 = arith.constant 0 : index
    %1 = vector.load %arg3[%c0_1, %c0_2] : memref<128x64xf32, #tpu.memory_space<vmem>>, vector<128x64xf32>
    %cst = arith.constant 2.000000e+01 : f32
    %2 = vector.broadcast %cst : f32 to vector<128x64xf32>
    %3 = arith.cmpf ogt, %1, %2 : vector<128x64xf32>
    %4 = math.exp %1 : vector<128x64xf32>
    %5 = math.log1p %4 : vector<128x64xf32>
    %6 = arith.select %3, %1, %5 : vector<128x64xi1>, vector<128x64xf32>
    %c0_3 = arith.constant 0 : index
    %c0_4 = arith.constant 0 : index
    %7 = vector.load %arg4[%c0_3, %c0_4] : memref<128x64xf32, #tpu.memory_space<vmem>>, vector<128x64xf32>
    %8 = arith.mulf %6, %7 : vector<128x64xf32>
    %9 = arith.addf %0, %8 : vector<128x64xf32>
    %c0_5 = arith.constant 0 : index
    %c0_6 = arith.constant 0 : index
    %10 = vector.load %arg5[%c0_5, %c0_6] : memref<1x64xf32, #tpu.memory_space<vmem>>, vector<1x64xf32>
    %c0_7 = arith.constant 0 : index
    %c0_8 = arith.constant 0 : index
    %11 = vector.load %arg6[%c0_7, %c0_8] : memref<1x64xf32, #tpu.memory_space<vmem>>, vector<1x64xf32>
    %cst_9 = arith.constant 2.000000e+01 : f32
    %12 = vector.broadcast %cst_9 : f32 to vector<1x64xf32>
    %13 = arith.cmpf ogt, %11, %12 : vector<1x64xf32>
    %14 = math.exp %11 : vector<1x64xf32>
    %15 = math.log1p %14 : vector<1x64xf32>
    %16 = arith.select %13, %11, %15 : vector<1x64xi1>, vector<1x64xf32>
    %c0_10 = arith.constant 0 : index
    %c0_11 = arith.constant 0 : index
    %17 = vector.load %arg7[%c0_10, %c0_11] : memref<1x64xf32, #tpu.memory_space<vmem>>, vector<1x64xf32>
    %18 = arith.mulf %16, %17 : vector<1x64xf32>
    %19 = arith.addf %10, %18 : vector<1x64xf32>
    %c0_12 = arith.constant 0 : index
    %c0_13 = arith.constant 0 : index
    %20 = vector.load %arg1[%c0_12, %c0_13] : memref<16x128xf32, #tpu.memory_space<vmem>>, vector<16x128xf32>
    %cst_14 = arith.constant dense<0.000000e+00> : vector<16x64xf32>
    %21 = tpu.matmul %20, %9, %cst_14 {dimension_numbers = #tpu.dot_dimension_numbers<[1], [0], [0], [1], [0, 0, 1, 1], [], []>} : vector<16x128xf32>, vector<128x64xf32>, vector<16x64xf32> -> vector<16x64xf32>
    %22 = vector.broadcast %19 : vector<1x64xf32> to vector<16x64xf32>
    %23 = arith.addf %21, %22 : vector<16x64xf32>
    %c0_15 = arith.constant 0 : index
    %c0_16 = arith.constant 0 : index
    %24 = vector.load %arg8[%c0_15, %c0_16] : memref<16x64xf32, #tpu.memory_space<vmem>>, vector<16x64xf32>
    tpu.vector_store %arg8[%c0_15, %c0_16], %23 {strides = array<i32>} : memref<16x64xf32, #tpu.memory_space<vmem>>, vector<16x64xf32>,
    return
  }
  func.func @transform_0(%arg0: i32) -> (i32, i32) {
    %c0_i32 = arith.constant 0 : i32
    %c0_i32_0 = arith.constant 0 : i32
    return %arg0, %c0_i32 : i32, i32
  }
  func.func @transform_1(%arg0: i32) -> (i32, i32) {
    %c0_i32 = arith.constant 0 : i32
    %c0_i32_0 = arith.constant 0 : i32
    %c0_i32_1 = arith.constant 0 : i32
    return %c0_i32, %c0_i32_0 : i32, i32
  }
  func.func @transform_2(%arg0: i32) -> (i32, i32) {
    %c0_i32 = arith.constant 0 : i32
    %c0_i32_0 = arith.constant 0 : i32
    %c0_i32_1 = arith.constant 0 : i32
    return %c0_i32, %c0_i32_0 : i32, i32
  }
  func.func @transform_3(%arg0: i32) -> (i32, i32) {
    %c0_i32 = arith.constant 0 : i32
    %c0_i32_0 = arith.constant 0 : i32
    %c0_i32_1 = arith.constant 0 : i32
    return %c0_i32, %c0_i32_0 : i32, i32
  }
  func.func @transform_4(%arg0: i32) -> (i32, i32) {
    %c0_i32 = arith.constant 0 : i32
    %c0_i32_0 = arith.constant 0 : i32
    %c0_i32_1 = arith.constant 0 : i32
    return %c0_i32, %c0_i32_0 : i32, i32
  }
  func.func @transform_5(%arg0: i32) -> (i32, i32) {
    %c0_i32 = arith.constant 0 : i32
    %c0_i32_0 = arith.constant 0 : i32
    %c0_i32_1 = arith.constant 0 : i32
    return %c0_i32, %c0_i32_0 : i32, i32
  }
  func.func @transform_6(%arg0: i32) -> (i32, i32) {
    %c0_i32 = arith.constant 0 : i32
    %c0_i32_0 = arith.constant 0 : i32
    %c0_i32_1 = arith.constant 0 : i32
    return %c0_i32, %c0_i32_0 : i32, i32
  }
  func.func @transform_7(%arg0: i32) -> (i32, i32) {
    %c0_i32 = arith.constant 0 : i32
    %c0_i32_0 = arith.constant 0 : i32
    return %arg0, %c0_i32 : i32, i32
  }
}

</mosaic_0001>

<bundles_post_ra>
// kernel: tpu_custom_call.1
= control target key start
LH: loop header
LB: loop body
LE: loop exit
PB: predicated region body
PF: predicated region fallthrough
CT: control target
= control target key end

     0   :  { %s1056_s0 = inlined_call_operand.vmem [shape: f32[16,128], index: 0, kind: input, shape index: {}]   ;;  %s1057_s1 = inlined_call_operand.vmem [shape: f32[128,64], index: 1, kind: input, shape index: {}]   ;;  %s1058_s2 = inlined_call_operand.vmem [shape: f32[128,64], index: 2, kind: input, shape index: {}]   ;;  %s1059_s3 = inlined_call_operand.vmem [shape: f32[128,64], index: 3, kind: input, shape index: {}]   ;;  %s1060_s4 = inlined_call_operand.vmem [shape: f32[1,64], index: 4, kind: input, shape index: {}]   ;;  %s1061_s5 = inlined_call_operand.vmem [shape: f32[1,64], index: 5, kind: input, shape index: {}]   ;;  %s1062_s6 = inlined_call_operand.vmem [shape: f32[1,64], index: 6, kind: input, shape index: {}]   ;;  %s1063_s7 = inlined_call_operand.hbm [shape: f32[16,64], index: 7, kind: output, shape index: {}]  }
   0x1   :  { %v627_v0 = vld [vmem:[%s1058_s2 + $0x78] sm:$0xff]  ;;  %v633_v2 = vld [vmem:[%s1058_s2 + $0x70] sm:$0xff]  ;;  %v639_v4 = vld [vmem:[%s1058_s2 + $0x68] sm:$0xff] }
   0x2   :  { %v105_v1 = vmul.f32 1.442695, %v627_v0  ;;  %v103_v3 = vmul.f32 1.442695, %v633_v2  ;;  %v101_v5 = vmul.f32 1.442695, %v639_v4 }
   0x3   :  { %v645_v6 = vld [vmem:[%s1058_s2 + $0x60] sm:$0xff]  ;;  %v651_v8 = vld [vmem:[%s1058_s2 + $0x58] sm:$0xff]  ;;  %v657_v10 = vld [vmem:[%s1058_s2 + $0x50] sm:$0xff] }
   0x4   :  { %491 = vpow2.f32 %v105_v1  ;;  %v99_v7 = vmul.f32 1.442695, %v645_v6  ;;  %v97_v9 = vmul.f32 1.442695, %v651_v8  ;;  %v95_v11 = vmul.f32 1.442695, %v657_v10 }
   0x5   :  { %493 = vpow2.f32 %v103_v3  ;;  %v663_v12 = vld [vmem:[%s1058_s2 + $0x48] sm:$0xff]  ;;  %v669_v14 = vld [vmem:[%s1058_s2 + $0x40] sm:$0xff]  ;;  %v675_v16 = vld [vmem:[%s1058_s2 + $0x38] sm:$0xff] }
   0x6   :  { %495 = vpow2.f32 %v101_v5  ;;  %v93_v13 = vmul.f32 1.442695, %v663_v12  ;;  %v91_v15 = vmul.f32 1.442695, %v669_v14  ;;  %v89_v17 = vmul.f32 1.442695, %v675_v16 }
   0x7   :  { %497 = vpow2.f32 %v99_v7  ;;  %v681_v18 = vld [vmem:[%s1058_s2 + $0x30] sm:$0xff]  ;;  %v687_v20 = vld [vmem:[%s1058_s2 + $0x28] sm:$0xff]  ;;  %v693_v22 = vld [vmem:[%s1058_s2 + $0x20] sm:$0xff] }
   0x8   :  { %499 = vpow2.f32 %v97_v9  ;;  %v87_v19 = vmul.f32 1.442695, %v681_v18  ;;  %v85_v21 = vmul.f32 1.442695, %v687_v20  ;;  %v83_v23 = vmul.f32 1.442695, %v693_v22 }
   0x9   :  { %501 = vpow2.f32 %v95_v11  ;;  %v699_v24 = vld [vmem:[%s1058_s2 + $0x18] sm:$0xff]  ;;  %v705_v26 = vld [vmem:[%s1058_s2 + $0x10] sm:$0xff]  ;;  %v711_v28 = vld [vmem:[%s1058_s2 + $0x8] sm:$0xff] }
   0xa   :  { %503 = vpow2.f32 %v93_v13  ;;  %v81_v25 = vmul.f32 1.442695, %v699_v24  ;;  %v79_v27 = vmul.f32 1.442695, %v705_v26  ;;  %v716_v30 = vld [vmem:[%s1058_s2] sm:$0xff] }
   0xb   :  { %505 = vpow2.f32 %v91_v15  ;;  %v333_v31 = vld [vmem:[%s1056_s0] sm:$0xff]  ;;  %v77_v34 = vmul.f32 1.442695, %v711_v28  ;;  %v75_v41 = vmul.f32 1.442695, %v716_v30 }
   0xc   :  { %507 = vpow2.f32 %v89_v17  ;;  %485 = vmatprep.mubr.f32.mxu0 %v333_v31 }
   0xd   :  { %509 = vpow2.f32 %v87_v19 }
   0xe   :  { %511 = vpow2.f32 %v85_v21 }
   0xf   :  { %513 = vpow2.f32 %v83_v23 }
  0x10   :  { %515 = vpow2.f32 %v81_v25 }
  0x11   :  { %v492_v29 = vpop.eup %491  ;;  %517 = vpow2.f32 %v79_v27 }
  0x12   :  { %v494_v32 = vpop.eup %493  ;;  %v242_v33 = vadd.f32 1.0, %v492_v29  ;;  %v245_v36 = vmul.f32 -0.5, %v492_v29  ;;  %v248_v43 = vand.u32 2147483647, %v492_v29 }
  0x13   :  { %v496_v35 = vpop.eup %495  ;;  %v233_v37 = vadd.f32 1.0, %v494_v32  ;;  %v236_v38 = vmul.f32 -0.5, %v494_v32 }
  0x14   :  { %v498_v39 = vpop.eup %497  ;;  %519 = vlog2.f32 %v242_v33  ;;  %v224_v40 = vadd.f32 1.0, %v496_v35  ;;  %v227_v44 = vmul.f32 -0.5, %v496_v35 }
  0x15   :  { %v723_v42 = vpop.eup %499  ;;  %521 = vlog2.f32 %v233_v37 }
  0x16   :  { %12 = vsyncpa [#allocation3], 0  ;;  %v239_v45 = vand.u32 2147483647, %v494_v32  ;;  %523 = vlog2.f32 %v224_v40  ;;  %v215_v46 = vadd.f32 1.0, %v498_v39  ;;  %v725_v47 = vpop.eup %501  ;;  %v246_v48 = vadd.f32 1.0, %v245_v36 }
  0x17   :  { %v237_v49 = vadd.f32 1.0, %v236_v38  ;;  %v230_v50 = vand.u32 2147483647, %v496_v35  ;;  %525 = vpow2.f32 %v77_v34  ;;  %v727_v51 = vpop.eup %503  ;;  %v218_v52 = vmul.f32 -0.5, %v498_v39  ;;  %s581_s8 = smov [#allocation2]  }
  0x18   :  { %527 = vlog2.f32 %v215_v46  ;;  %v206_v53 = vadd.f32 1.0, %v723_v42  ;;  %vm730_vm0 = vcmp.lt.f32.partialorder %v248_v43, 0.0004427343  ;;  %v228_v55 = vadd.f32 1.0, %v227_v44  ;;  %v735_v57 = vpop.eup %505  ;;  %s424_s9 = sshll.u32 %s581_s8, 4  ;;  %s425_s9 = int_to_ptr.vmem [resolvable:$true] %s424_s9 }
  0x19   :  { %v209_v56 = vmul.f32 -0.5, %v723_v42  ;;  %529 = vpow2.f32 %v75_v41  ;;  %vm74_vm1 = vcmp.gt.f32.partialorder %v627_v0, 20.0  ;;  %vm738_vm2 = vcmp.lt.f32.partialorder %v239_v45, 0.0004427343  ;;  %v744_v62 = vpop.eup %507  ;;  %p564_p1 = scmp.lt.s32.totalorder %s425_s9, %s425_s9 }
  0x1a   :  { %v221_v59 = vand.u32 2147483647, %v498_v39  ;;  %531 = vlog2.f32 %v206_v53  ;;  %v197_v60 = vadd.f32 1.0, %v725_v47  ;;  %v200_v61 = vmul.f32 -0.5, %v725_v47  ;;  %v754_v7 = vpop.eup %509 }
  0x1b   :  { %v247_v63 = vmul.f32 %v492_v29, %v246_v48  ;;  %vm73_vm3 = vcmp.gt.f32.partialorder %v633_v2, 20.0  ;;  %v747_v1 = vmul.f32 %v494_v32, %v237_v49  ;;  %vm749_vm4 = vcmp.lt.f32.partialorder %v230_v50, 0.0004427343  ;;  %v759_v15 = vpop.eup %511 }
  0x1c   :  { %v188_v5 = vadd.f32 1.0, %v727_v51  ;;  %vm72_vm5 = vcmp.gt.f32.partialorder %v639_v4, 20.0  ;;  %v219_v9 = vadd.f32 1.0, %v218_v52  ;;  %v212_v11 = vand.u32 2147483647, %v723_v42  ;;  %v764_v23 = vpop.eup %513 }
  0x1d   :  { %533 = vlog2.f32 %v197_v60  ;;  %v191_v13 = vmul.f32 -0.5, %v727_v51  ;;  %v761_v17 = vmul.f32 %v496_v35, %v228_v55  ;;  %v210_v19 = vadd.f32 1.0, %v209_v56  ;;  %v773_v32 = vpop.eup %515 }
  0x1e   :  { %535 = vlog2.f32 %v188_v5  ;;  %v179_v21 = vadd.f32 1.0, %v735_v57  ;;  %vm71_vm6 = vcmp.gt.f32.partialorder %v645_v6, 20.0  ;;  %vm767_vm7 = vcmp.lt.f32.partialorder %v221_v59, 0.0004427343  ;;  %v777_v36 = vpop.eup %517 }
  0x1f   :  { %v201_v27 = vadd.f32 1.0, %v200_v61  ;;  %v203_v29 = vand.u32 2147483647, %v725_v47  ;;  %v182_v31 = vmul.f32 -0.5, %v735_v57  ;;  %v192_v33 = vadd.f32 1.0, %v191_v13  ;;  %v281_v61 = vld [vmem:[%s1059_s3 + $0x70] sm:$0xff] }
  0x20   :  { %v194_v34 = vand.u32 2147483647, %v727_v51  ;;  %537 = vlog2.f32 %v179_v21  ;;  %v170_v35 = vadd.f32 1.0, %v744_v62  ;;  %v220_v37 = vmul.f32 %v498_v39, %v219_v9  ;;  %v280_v21 = vld [vmem:[%s1059_s3 + $0x68] sm:$0xff]  ;;  %v35_v9 = vld [vmem:[%s1057_s1 + $0x40] sm:$0xff] }
  0x21   :  { %vm70_vm8 = vcmp.gt.f32.partialorder %v651_v8, 20.0  ;;  %vm780_vm9 = vcmp.lt.f32.partialorder %v212_v11, 0.0004427343  ;;  %v185_v40 = vand.u32 2147483647, %v735_v57  ;;  %v173_v41 = vmul.f32 -0.5, %v744_v62  ;;  %v520_v43 = vpop.eup %519 }
  0x22   :  { %v787_v44 = vmul.f32 %v723_v42, %v210_v19  ;;  %v183_v45 = vadd.f32 1.0, %v182_v31  ;;  %539 = vlog2.f32 %v170_v35  ;;  %v161_v46 = vadd.f32 1.0, %v754_v7  ;;  %v522_v48 = vpop.eup %521  ;;  %v282_v42 = vld [vmem:[%s1059_s3 + $0x78] sm:$0xff] }
  0x23   :  { %v244_v39 = vmul.f32 0.6931472, %v520_v43  ;;  %vm69_vm10 = vcmp.gt.f32.partialorder %v657_v10, 20.0  ;;  %v792_v49 = vmul.f32 %v725_v47, %v201_v27  ;;  %vm794_vm11 = vcmp.lt.f32.partialorder %v203_v29, 0.0004427343  ;;  %v524_v53 = vpop.eup %523  ;;  %v42_v19 = vld [vmem:[%s1057_s1 + $0x78] sm:$0xff] }
  0x24   :  { %v176_v52 = vand.u32 2147483647, %v744_v62  ;;  %v235_v55 = vmul.f32 0.6931472, %v522_v48  ;;  %vm68_vm12 = vcmp.gt.f32.partialorder %v663_v12, 20.0  ;;  %v804_v56 = vmul.f32 %v727_v51, %v192_v33  ;;  %v810_v59 = vpop.eup %525 }
  0x25   :  { %vm806_vm13 = vcmp.lt.f32.partialorder %v194_v34, 0.0004427343  ;;  %541 = vlog2.f32 %v161_v46  ;;  %v250_v60 = vsel %vm730_vm0, %v247_v63, %v244_v39  ;;  %v226_v5 = vmul.f32 0.6931472, %v524_v53  ;;  %v528_v13 = vpop.eup %527 }
  0x26   :  { %vm817_vm14 = vcmp.lt.f32.partialorder %v185_v40, 0.0004427343  ;;  %v174_v51 = vadd.f32 1.0, %v173_v41  ;;  %v152_v11 = vadd.f32 1.0, %v759_v15  ;;  %v266_v54 = vsel %vm74_vm1, %v627_v0, %v250_v60  ;;  %v839_v31 = vpop.eup %529  ;;  %v41_v0 = vld [vmem:[%s1057_s1 + $0x70] sm:$0xff]  ;;  %v40_v41 = vld [vmem:[%s1057_s1 + $0x68] sm:$0xff] }
  0x27   :  { %v241_v63 = vsel %vm738_vm2, %v747_v1, %v235_v55  ;;  %vm67_vm15 = vcmp.gt.f32.partialorder %v669_v14, 20.0  ;;  %v836_v27 = vmul.f32 %v735_v57, %v183_v45  ;;  %v164_v29 = vmul.f32 -0.5, %v754_v7  ;;  %v532_v35 = vpop.eup %531  ;;  %v34_v57 = vld [vmem:[%s1057_s1 + $0x38] sm:$0xff] }
  0x28   :  { %v298_v33 = vmul.f32 %v282_v42, %v266_v54  ;;  %v265_v58 = vsel %vm73_vm3, %v633_v2, %v241_v63  ;;  %v232_v1 = vsel %vm749_vm4, %v761_v17, %v226_v5  ;;  %v217_v34 = vmul.f32 0.6931472, %v528_v13  ;;  %v279_v2 = vld [vmem:[%s1059_s3 + $0x60] sm:$0xff]  ;;  %v278_v42 = vld [vmem:[%s1059_s3 + $0x58] sm:$0xff] }
  0x29   :  { %vm850_vm0 = vcmp.lt.f32.partialorder %v176_v52, 0.0004427343  ;;  %v297_v40 = vmul.f32 %v281_v61, %v265_v58  ;;  %v264_v43 = vsel %vm72_vm5, %v639_v4, %v232_v1  ;;  %vm66_vm1 = vcmp.gt.f32.partialorder %v675_v16, 20.0  ;;  %v39_v4 = vld [vmem:[%s1057_s1 + $0x60] sm:$0xff] }
  0x2a   :  { %v167_v3 = vand.u32 2147483647, %v754_v7  ;;  %543 = vlog2.f32 %v152_v11  ;;  %v314_v17 = vadd.f32 %v298_v33, %v42_v19  ;;  %v296_v45 = vmul.f32 %v280_v21, %v264_v43  ;;  %v534_v39 = vpop.eup %533  ;;  %v37_v33 = vld [vmem:[%s1057_s1 + $0x50] sm:$0xff] }
  0x2b   :  { %v223_v46 = vsel %vm767_vm7, %v220_v37, %v217_v34  ;;  %v208_v48 = vmul.f32 0.6931472, %v532_v35  ;;  %v313_v52 = vadd.f32 %v297_v40, %v41_v0  ;;  %v175_v55 = vmul.f32 %v744_v62, %v174_v51  ;;  %v536_v37 = vpop.eup %535  ;;  %v277_v51 = vld [vmem:[%s1059_s3 + $0x50] sm:$0xff]  ;;  %v275_v40 = vld [vmem:[%s1059_s3 + $0x40] sm:$0xff] }
  0x2c   :  { %v263_v53 = vsel %vm71_vm6, %v645_v6, %v223_v46  ;;  %vm65_vm2 = vcmp.gt.f32.partialorder %v681_v18, 20.0  ;;  %v165_v25 = vadd.f32 1.0, %v164_v29  ;;  %453 = vmatprep.subr.mxu0 %v314_v17  ;;  %v312_v60 = vadd.f32 %v296_v45, %v40_v41  ;;  %v38_v6 = vld [vmem:[%s1057_s1 + $0x58] sm:$0xff] }
  0x2d   :  { %v295_v61 = vmul.f32 %v279_v2, %v263_v53  ;;  %v214_v5 = vsel %vm780_vm9, %v787_v44, %v208_v48  ;;  %v199_v11 = vmul.f32 0.6931472, %v534_v39  ;;  %454 = vmatpush3.msra.mxu0 %v314_v17  ;;  %v190_v13 = vmul.f32 0.6931472, %v536_v37  ;;  %v538_v44 = vpop.eup %537  ;;  %v273_v53 = vld [vmem:[%s1059_s3 + $0x30] sm:$0xff] }
  0x2e   :  { %v262_v62 = vsel %vm70_vm8, %v651_v8, %v214_v5  ;;  %v155_v19 = vmul.f32 -0.5, %v759_v15  ;;  %v143_v38 = vadd.f32 1.0, %v764_v23  ;;  %455 = vmatprep.subr.mxu0 %v313_v52  ;;  %v276_v8 = vld [vmem:[%s1059_s3 + $0x48] sm:$0xff]  ;;  %vm898_vm3 = vcmp.lt.f32.partialorder %v167_v3, 0.0004427343 }
  0x2f   :  { %v311_v54 = vadd.f32 %v295_v61, %v39_v4  ;;  %v294_v63 = vmul.f32 %v278_v42, %v262_v62  ;;  %v205_v21 = vsel %vm794_vm11, %v792_v49, %v199_v11  ;;  %456 = vmatpush3.msra.mxu0 %v313_v52  ;;  %v196_v49 = vsel %vm806_vm13, %v804_v56, %v190_v13  ;;  %v540_v58 = vpop.eup %539  ;;  %v36_v56 = vld [vmem:[%s1057_s1 + $0x48] sm:$0xff]  ;;  %v33_v11 = vld [vmem:[%s1057_s1 + $0x30] sm:$0xff] }
  0x30   :  { %v261_v0 = vsel %vm69_vm10, %v657_v10, %v205_v21  ;;  %v181_v50 = vmul.f32 0.6931472, %v538_v44  ;;  %545 = vlog2.f32 %v143_v38  ;;  %457 = vmatprep.subr.mxu0 %v312_v60  ;;  %v260_v35 = vsel %vm68_vm12, %v663_v12, %v196_v49 }
  0x31   :  { %v310_v1 = vadd.f32 %v294_v63, %v38_v6  ;;  %v293_v34 = vmul.f32 %v277_v51, %v261_v0  ;;  %v166_v10 = vmul.f32 %v754_v7, %v165_v25  ;;  %458 = vmatpush3.msra.mxu0 %v312_v60  ;;  %v292_v47 = vmul.f32 %v276_v8, %v260_v35  ;;  %v274_v7 = vld [vmem:[%s1059_s3 + $0x38] sm:$0xff]  ;;  %v32_v63 = vld [vmem:[%s1057_s1 + $0x28] sm:$0xff] }
  0x32   :  { %v187_v41 = vsel %vm817_vm14, %v836_v27, %v181_v50  ;;  %v172_v43 = vmul.f32 0.6931472, %v540_v58  ;;  %v156_v2 = vadd.f32 1.0, %v155_v19  ;;  %v542_v3 = vpop.eup %541  ;;  %459 = vmatprep.subr.mxu0 %v311_v54  ;;  %v158_v45 = vand.u32 2147483647, %v759_v15 }
  0x33   :  { %v309_v12 = vadd.f32 %v293_v34, %v37_v33  ;;  %v259_v17 = vsel %vm67_vm15, %v669_v14, %v187_v41  ;;  %v134_v46 = vadd.f32 1.0, %v773_v32  ;;  %460 = vmatpush3.msra.mxu0 %v311_v54  ;;  %v163_v39 = vmul.f32 0.6931472, %v542_v3 }
  0x34   :  { %v291_v27 = vmul.f32 %v275_v40, %v259_v17  ;;  %v178_v48 = vsel %vm850_vm0, %v175_v55, %v172_v43  ;;  %v146_v14 = vmul.f32 -0.5, %v764_v23  ;;  %461 = vmatprep.subr.mxu0 %v310_v1  ;;  %v308_v52 = vadd.f32 %v292_v47, %v36_v56 }
  0x35   :  { %v258_v4 = vsel %vm66_vm1, %v675_v16, %v178_v48  ;;  %547 = vlog2.f32 %v134_v46  ;;  %462 = vmatpush3.msra.mxu0 %v310_v1  ;;  %v169_v55 = vsel %vm898_vm3, %v166_v10, %v163_v39  ;;  %v157_v25 = vmul.f32 %v759_v15, %v156_v2  ;;  %v31_v10 = vld [vmem:[%s1057_s1 + $0x20] sm:$0xff]  ;;  %v30_v48 = vld [vmem:[%s1057_s1 + $0x18] sm:$0xff] }
  0x36   :  { %v290_v42 = vmul.f32 %v274_v7, %v258_v4  ;;  %463 = vmatprep.subr.mxu0 %v309_v12  ;;  %v307_v60 = vadd.f32 %v291_v27, %v35_v9  ;;  %v257_v16 = vsel %vm65_vm2, %v681_v18, %v169_v55  ;;  %vm953_vm4 = vcmp.lt.f32.partialorder %v158_v45, 0.0004427343  ;;  %v272_v18 = vld [vmem:[%s1059_s3 + $0x28] sm:$0xff]  ;;  %v270_v45 = vld [vmem:[%s1059_s3 + $0x18] sm:$0xff] }
  0x37   :  { %v544_v37 = vpop.eup %543  ;;  %v125_v5 = vadd.f32 1.0, %v777_v36  ;;  %464 = vmatpush3.msra.mxu0 %v309_v12  ;;  %v289_v6 = vmul.f32 %v273_v53, %v257_v16  ;;  %vm64_vm5 = vcmp.gt.f32.partialorder %v687_v20, 20.0  ;;  %v147_v62 = vadd.f32 1.0, %v146_v14 }
  0x38   :  { %v154_v15 = vmul.f32 0.6931472, %v544_v37  ;;  %465 = vmatprep.subr.mxu0 %v308_v52  ;;  %v306_v51 = vadd.f32 %v290_v42, %v34_v57  ;;  %v149_v13 = vand.u32 2147483647, %v764_v23  ;;  %v137_v19 = vmul.f32 -0.5, %v773_v32  ;;  %v29_v37 = vld [vmem:[%s1057_s1 + $0x10] sm:$0xff] }
  0x39   :  { %549 = vlog2.f32 %v125_v5  ;;  %466 = vmatpush3.msra.mxu0 %v308_v52  ;;  %v116_v44 = vadd.f32 1.0, %v810_v59  ;;  %v305_v54 = vadd.f32 %v289_v6, %v33_v11  ;;  %v148_v29 = vmul.f32 %v764_v23, %v147_v62  ;;  %v271_v23 = vld [vmem:[%s1059_s3 + $0x20] sm:$0xff]  ;;  %v268_v11 = vld [vmem:[%s1059_s3 + $0x8] sm:$0xff] }
  0x3a   :  { %v160_v38 = vsel %vm953_vm4, %v157_v25, %v154_v15  ;;  %467 = vmatprep.subr.mxu0 %v307_v60  ;;  %v107_v33 = vadd.f32 1.0, %v839_v31  ;;  %vm63_vm6 = vcmp.gt.f32.partialorder %v693_v22, 20.0  ;;  %vm977_vm7 = vcmp.lt.f32.partialorder %v149_v13, 0.0004427343 }
  0x3b   :  { %v256_v21 = vsel %vm64_vm5, %v687_v20, %v160_v38  ;;  %468 = vmatpush3.msra.mxu0 %v307_v60  ;;  %551 = vlog2.f32 %v116_v44  ;;  %v138_v50 = vadd.f32 1.0, %v137_v19  ;;  %v128_v58 = vmul.f32 -0.5, %v777_v36  ;;  %v27_v19 = vld [vmem:[%s1057_s1] sm:$0xff] }
  0x3c   :  { %v288_v8 = vmul.f32 %v272_v18, %v256_v21  ;;  %469 = vmatprep.subr.mxu0 %v306_v51  ;;  %v140_v34 = vand.u32 2147483647, %v773_v32  ;;  %553 = vlog2.f32 %v107_v33  ;;  %v119_v40 = vmul.f32 -0.5, %v810_v59  ;;  %v316_v21 = vld [vmem:[%s1061_s5] sm:$0x1] }
  0x3d   :  { %v546_v0 = vpop.eup %545  ;;  %470 = vmatpush3.msra.mxu0 %v306_v51  ;;  %v139_v47 = vmul.f32 %v773_v32, %v138_v50  ;;  %v129_v41 = vadd.f32 1.0, %v128_v58  ;;  %v131_v3 = vand.u32 2147483647, %v777_v36  ;;  %v110_v12 = vmul.f32 -0.5, %v839_v31  ;;  %v267_v51 = vld [vmem:[%s1059_s3] sm:$0xff] }
  0x3e   :  { %v304_v20 = vadd.f32 %v288_v8, %v32_v63  ;;  %v145_v1 = vmul.f32 0.6931472, %v546_v0  ;;  %471 = vmatprep.subr.mxu0 %v305_v54  ;;  %vm141_vm8 = vcmp.lt.f32.partialorder %v140_v34, 0.0004427343  ;;  %vm62_vm9 = vcmp.gt.f32.partialorder %v699_v24, 20.0 }
  0x3f   :  { %472 = vmatpush3.msra.mxu0 %v305_v54  ;;  %v130_v32 = vmul.f32 %v777_v36, %v129_v41  ;;  %v122_v9 = vand.u32 2147483647, %v810_v59  ;;  %vm132_vm10 = vcmp.lt.f32.partialorder %v131_v3, 0.0004427343  ;;  %v111_v14 = vadd.f32 1.0, %v110_v12  ;;  %v269_v36 = vld [vmem:[%s1059_s3 + $0x10] sm:$0xff] }
  0x40   :  { %v151_v35 = vsel %vm977_vm7, %v148_v29, %v145_v1  ;;  %473 = vmatprep.subr.mxu0 %v304_v20  ;;  %vm61_vm11 = vcmp.gt.f32.partialorder %v705_v26, 20.0  ;;  %v113_v53 = vand.u32 2147483647, %v839_v31  ;;  %vm60_vm13 = vcmp.gt.f32.partialorder %v711_v28, 20.0 }
  0x41   :  { %v255_v56 = vsel %vm63_vm6, %v693_v22, %v151_v35  ;;  %474 = vmatpush3.msra.mxu0 %v304_v20  ;;  %v120_v22 = vadd.f32 1.0, %v119_v40  ;;  %vm1014_vm12 = vcmp.lt.f32.partialorder %v122_v9, 0.0004427343  ;;  %v112_v61 = vmul.f32 %v839_v31, %v111_v14  ;;  %v28_v31 = vld [vmem:[%s1057_s1 + $0x8] sm:$0xff]  ;;  %v330_v35 = vld [vmem:[%s1062_s6] sm:$0x1] }
  0x42   :  { %v548_v43 = vpop.eup %547  ;;  %v287_v2 = vmul.f32 %v271_v23, %v255_v56  ;;  %vm114_vm14 = vcmp.lt.f32.partialorder %v113_v53, 0.0004427343  ;;  %vm59_vm15 = vcmp.gt.f32.partialorder %v716_v30, 20.0  ;;  %v318_v8 = vmul.f32 1.442695, %v316_v21  ;;  %s559_s6 = scalar_lea.vmem %s425_s9, 256 }
  0x43   :  { %v136_v17 = vmul.f32 0.6931472, %v548_v43  ;;  %v121_v57 = vmul.f32 %v810_v59, %v120_v22  ;;  %vm317_vm1 = vcmp.gt.f32.partialorder %v316_v21, 20.0  ;;  %v336_v34 = vlaneseq  ;;  %v315_v56 = vld [vmem:[%s1060_s4] sm:$0x1]  ;;  %p560_p0 = scmp.ne.s32.totalorder %s425_s9, %s559_s6  ;;  %p565_p2 = scmp.lt.s32.totalorder %s559_s6, %s559_s6 }
  0x44   :  { %v303_v7 = vadd.f32 %v287_v2, %v31_v10  ;;  %555 = vpow2.f32 %v318_v8  ;;  %vm416_vm2 = vcmask 523264  }
  0x45   :  { %v142_v46 = vsel %vm141_vm8, %v139_v47, %v136_v17  ;;  %v337_v10 = vshrl.u32 %v336_v34, 7  ;;  %p566_p3 = por %p565_p2, %p564_p1 }
  0x46   :  { %v550_v27 = vpop.eup %549  ;;  %475 = vmatprep.subr.mxu0 %v303_v7  ;;  %v254_v39 = vsel %vm62_vm9, %v699_v24, %v142_v46 }
  0x47   :  { %476 = vmatpush3.msra.mxu0 %v303_v7  ;;  %v286_v52 = vmul.f32 %v270_v45, %v254_v39  ;;  %v127_v4 = vmul.f32 0.6931472, %v550_v27  ;;  %v338_v41 = vsub.s32 0, %v337_v10  ;;  %p567_p4 = pnand %p566_p3, %p560_p0 }
  0x48   :  { %v552_v42 = vpop.eup %551 }
  0x49   :  { %v302_v55 = vadd.f32 %v286_v52, %v30_v48  ;;  %v133_v25 = vsel %vm132_vm10, %v130_v32, %v127_v4  ;;  %v118_v16 = vmul.f32 0.6931472, %v552_v42  ;;  %v554_v5 = vpop.eup %553 }
  0x4a   :  { %v253_v60 = vsel %vm61_vm11, %v705_v26, %v133_v25  ;;  %v109_v26 = vmul.f32 0.6931472, %v554_v5 }
  0x4b   :  { %477 = vmatprep.subr.mxu0 %v302_v55  ;;  %v285_v59 = vmul.f32 %v269_v36, %v253_v60  ;;  %v124_v6 = vsel %vm1014_vm12, %v121_v57, %v118_v16 }
  0x4c   :  { %478 = vmatpush3.msra.mxu0 %v302_v55  ;;  %v252_v62 = vsel %vm60_vm13, %v711_v28, %v124_v6  ;;  %v115_v13 = vsel %vm114_vm14, %v112_v61, %v109_v26  ;;  %v334_v28 = vld [vmem:[%s1056_s0 + $0x8] sm:$0xff] }
  0x4d   :  { %v301_v15 = vadd.f32 %v285_v59, %v29_v37  ;;  %v284_v18 = vmul.f32 %v268_v11, %v252_v62  ;;  %v251_v38 = vsel %vm59_vm15, %v716_v30, %v115_v13 }
  0x4e   :  { %v283_v54 = vmul.f32 %v267_v51, %v251_v38 }
  0x4f   :  { %479 = vmatprep.subr.mxu0 %v301_v15  ;;  %v300_v44 = vadd.f32 %v284_v18, %v28_v31 }
  0x50   :  { %480 = vmatpush3.msra.mxu0 %v301_v15  ;;  %v299_v63 = vadd.f32 %v283_v54, %v27_v19 }
  0x51   :  { %481 = vmatprep.subr.mxu0 %v300_v44  ;;  %v556_v30 = vpop.eup %555 }
  0x52   :  { %482 = vmatpush3.msra.mxu0 %v300_v44  ;;  %v320_v29 = vadd.f32 1.0, %v556_v30  ;;  %v323_v33 = vmul.f32 -0.5, %v556_v30  ;;  %v326_v50 = vand.u32 2147483647, %v556_v30 }
  0x53   :  { %483 = vmatprep.subr.mxu0 %v299_v63 }
  0x54   :  { %484 = vmatpush3.msra.mxu0 %v299_v63  ;;  %557 = vlog2.f32 %v320_v29  ;;  %v324_v0 = vadd.f32 1.0, %v323_v33  ;;  %vm327_vm0 = vcmp.lt.f32.partialorder %v326_v50, 0.0004427343 }
  0x55   :  { %486 = vmatmul.mubr.f32.vlgmr.msra.gmra.mxu0 %v334_v28 }
  0x56   :  { %v325_v20 = vmul.f32 %v556_v30, %v324_v0 }
  0x61   :  { %v558_v49 = vpop.eup %557 }
  0x62   :  { %v322_v58 = vmul.f32 0.6931472, %v558_v49 }
  0x64   :  { %v328_v1 = vsel %vm327_vm0, %v325_v20, %v322_v58 }
  0x65   :  { %v329_v23 = vsel %vm317_vm1, %v316_v21, %v328_v1 }
  0x66   :  { %v331_v40 = vmul.f32 %v330_v35, %v329_v23 }
  0x68   :  { %v332_v47 = vadd.f32 %v331_v40, %v315_v56 }
  0x6a   :  { %v339_v43 = vrot.slane %v332_v47, %v338_v41 }
 0x115   :  { %v487_v2 = vpop.f32.mrf.mxu0 }
 0x116   :  { %v413_v3 = vadd.f32 %v487_v2, %v339_v43 }
 0x117   :  { %v407_v12 = vpop.f32.mrf.mxu0 }
 0x118   :  { %418 = vst.msk [vmem:[#allocation2 + $0x8] sm:$0xff] %vm416_vm2, %v413_v3  ;;  %v408_v17 = vadd.f32 %v407_v12, %v339_v43 }
 0x11a   :  { %417 = vst.msk [vmem:[#allocation2] sm:$0xff] %vm416_vm2, %v408_v17 }
 0x11b   :  { %570 = shalt.err (!%p567_p4)
}
 0x11c   :  { %s582_s4 = smov 128   ;;  %s583_s10 = smov 8  }
 0x11d   :  { %430 = dma.vmem_to_hbm [thread:$0]  %s425_s9, 256, %s1063_s7, [#allocation3], %s582_s4, %s582_s4, %s583_s10  }
 0x11e   :  { %579 = dma.done.wait [#allocation3], 256  }
 0x11f   :  { %580 = vsyncadd [#allocation3], 4294967040 }
 0x120   :  { %434 = vsyncpa [#allocation3], 1 }

</bundles_post_ra>
